<compile_context>
chip_gen: v6e
topology: v6e:2x2x1
jax: 0.10.0
libtpu: 0.0.40
codegen_flags: <defaults>
</compile_context>

<pallas_src>
import jax
import jax.numpy as jnp
from jax.experimental import pallas as pl
from jax.experimental.pallas import tpu as pltpu


# ----------------------------------------------------------------------------
# Kernel: elementwise X + attack on one lane-dense block.
# dtype promotion happens here (VPU cast is free) so HBM reads stay in the
# inputs' native (possibly narrower) dtypes.
# ----------------------------------------------------------------------------
def _add_attack_kernel(x_ref, attack_ref, out_ref):
    out_ref[...] = (x_ref[...].astype(out_ref.dtype)
                    + attack_ref[...].astype(out_ref.dtype))


_MIN_GRID_STEPS = 8          # keep >= ~8 steps on big inputs (feeds both v7x TCs)
_LANE_CANDIDATES = (1024, 512, 256, 128)


def _block_byte_cap() -> int:
    """Per-array block byte budget (3 arrays x 2 buffers must fit scoped VMEM)."""
    try:
        kind = jax.devices()[0].device_kind.lower()
    except Exception:
        kind = ""
    if "v5" in kind or kind == "":
        return 2 << 20       # v5e: 16 MiB scoped VMEM default -> 6 x 2 MiB = 12 MiB
    return 4 << 20           # v6e / v7x: 32 MiB scoped default -> 6 x 4 MiB = 24 MiB


def _pick_lane(total: int):
    for cand in _LANE_CANDIDATES:
        if total > 0 and total % cand == 0:
            return cand
    return None


def _pick_row_tile(rows: int, lane: int, max_itemsize: int) -> int:
    cap_rows = max(8, (_block_byte_cap() // (lane * max_itemsize)) // 8 * 8)
    row_tile = min(rows, cap_rows)
    # Ensure several grid steps on large inputs (v7x megacore + full DMA pipeline).
    if rows >= 8 * _MIN_GRID_STEPS:
        want = ((pl.cdiv(rows, _MIN_GRID_STEPS) + 7) // 8) * 8
        row_tile = min(row_tile, want)
    if row_tile != rows:
        row_tile = max(8, (row_tile // 8) * 8)   # (8,128) rule for partial tiles
    return row_tile


# ----------------------------------------------------------------------------
# Same-shape path: X and attack streamed as [rows, LANE] tiles.
# ----------------------------------------------------------------------------
def _add_same_shape(x, attack, out_dtype):
    total = int(x.size)
    lane = _pick_lane(total)
    if lane is None:
        # Odd total: padding would re-read/re-write the whole array; let XLA's
        # fused elementwise add handle this tiny/irregular case instead.
        return x.astype(out_dtype) + attack.astype(out_dtype)

    rows = total // lane
    max_item = max(jnp.dtype(x.dtype).itemsize,
                   jnp.dtype(attack.dtype).itemsize,
                   jnp.dtype(out_dtype).itemsize)
    row_tile = _pick_row_tile(rows, lane, max_item)

    x2 = jnp.reshape(x, (rows, lane))        # bitcast under jit (contiguous)
    a2 = jnp.reshape(attack, (rows, lane))

    grid = (pl.cdiv(rows, row_tile),)        # ragged last block handled by Pallas
    blk = (row_tile, lane)
    idx = lambda i: (i, 0)

    cost = pl.CostEstimate(
        flops=total,
        transcendentals=0,
        bytes_accessed=total * (jnp.dtype(x.dtype).itemsize
                                + jnp.dtype(attack.dtype).itemsize
                                + jnp.dtype(out_dtype).itemsize),
    )

    out2 = pl.pallas_call(
        _add_attack_kernel,
        out_shape=jax.ShapeDtypeStruct((rows, lane), out_dtype),
        grid_spec=pltpu.PrefetchScalarGridSpec(
            num_scalar_prefetch=0,
            grid=grid,
            in_specs=[pl.BlockSpec(blk, idx), pl.BlockSpec(blk, idx)],
            out_specs=pl.BlockSpec(blk, idx),
        ),
        compiler_params=pltpu.CompilerParams(
            dimension_semantics=("parallel",),
        ),
        cost_estimate=cost,
        # No input_output_aliases: under jit the operand is a bitcast view of
        # the caller's non-donated X; aliasing would force XLA to insert a
        # defensive copy (extra HBM pass) and saves no bandwidth anyway.
    )(x2, a2)

    return jnp.reshape(out2, x.shape)


# ----------------------------------------------------------------------------
# Broadcast path: attack broadcasts over leading batch dims of X.  The attack
# block's index_map is constant along the (innermost) batch axis, so it stays
# resident in VMEM and is read from HBM only once per row tile.
# ----------------------------------------------------------------------------
def _leading_broadcast_factor(x_shape, a_shape):
    core = tuple(a_shape)
    while core and core[0] == 1:
        core = core[1:]
    nd = len(core)
    if nd > len(x_shape) or tuple(x_shape[len(x_shape) - nd:]) != core:
        return None
    n_rep = 1
    for d in x_shape[:len(x_shape) - nd]:
        n_rep *= d
    return n_rep, core


def _add_broadcast(x, attack, out_dtype, n_rep, core_shape):
    a_size = int(attack.size)
    lane = _pick_lane(a_size)
    if lane is None or n_rep == 0:
        return x.astype(out_dtype) + attack.astype(out_dtype)

    rows_a = a_size // lane
    max_item = max(jnp.dtype(x.dtype).itemsize,
                   jnp.dtype(attack.dtype).itemsize,
                   jnp.dtype(out_dtype).itemsize)
    row_tile = _pick_row_tile(rows_a, lane, max_item)

    x3 = jnp.reshape(x, (n_rep, rows_a, lane))    # bitcast under jit
    a2 = jnp.reshape(attack, (rows_a, lane))

    # Batch axis is innermost so consecutive steps reuse the same attack block.
    grid = (pl.cdiv(rows_a, row_tile), n_rep)

    cost = pl.CostEstimate(
        flops=int(x.size),
        transcendentals=0,
        bytes_accessed=(int(x.size) * jnp.dtype(x.dtype).itemsize
                        + a_size * jnp.dtype(attack.dtype).itemsize
                        + int(x.size) * jnp.dtype(out_dtype).itemsize),
    )

    out3 = pl.pallas_call(
        _add_attack_kernel,
        out_shape=jax.ShapeDtypeStruct((n_rep, rows_a, lane), out_dtype),
        grid_spec=pltpu.PrefetchScalarGridSpec(
            num_scalar_prefetch=0,
            grid=grid,
            in_specs=[
                pl.BlockSpec((None, row_tile, lane), lambda r, b: (b, r, 0)),
                pl.BlockSpec((row_tile, lane), lambda r, b: (r, 0)),  # resident
            ],
            out_specs=pl.BlockSpec((None, row_tile, lane), lambda r, b: (b, r, 0)),
        ),
        compiler_params=pltpu.CompilerParams(
            dimension_semantics=("parallel", "arbitrary"),
        ),
        cost_estimate=cost,
    )(x3, a2)

    return jnp.reshape(out3, x.shape)


# ----------------------------------------------------------------------------
# Public wrapper (jitted: one executable, reshapes become bitcasts).
# ----------------------------------------------------------------------------
@jax.jit
def _apply_attack(x, attack):
    # PyTorch's `X + self.attack` promotes dtypes; mirror that explicitly.
    out_dtype = jnp.result_type(x.dtype, attack.dtype)
    if x.shape == attack.shape:
        return _add_same_shape(x, attack, out_dtype)
    bc = _leading_broadcast_factor(x.shape, attack.shape)
    if bc is not None:
        return _add_broadcast(x, attack, out_dtype, *bc)
    # General broadcasting patterns: XLA's fused add is the right tool.
    return (x + attack).astype(out_dtype)


def apply_attack(x: jax.Array, attack: jax.Array) -> jax.Array:
    """X_attacked = X + attack, computed by a Pallas TPU kernel."""
    return _apply_attack(x, attack)


class AttackPallas:
    """JAX/Pallas port of the PyTorch `Attack` module."""

    def __init__(self, attack_init: jax.Array):
        # Learnable parameter in the original; here a plain array from the caller.
        self.attack = attack_init

    def __call__(self, X, attention_mask, layer_handler=None, device=None):
        X_attacked = apply_attack(X, self.attack)
        # TODO(synk): layer_handler.pass_through_rest(X_attacked, attention_mask,
        # device) is an external downstream model with no definition here; when
        # that model is jitted together with this module, prefer letting XLA
        # fuse the add into its first op so X is read from HBM only once.
        if layer_handler is not None:
            return layer_handler.pass_through_rest(
                X_attacked, attention_mask, device
            )
        return X_attacked


if __name__ == "__main__":
    key = jax.random.PRNGKey(0)
    kx, ka = jax.random.split(key)

    B, S, H = 2, 8, 32  # batch, seq, hidden (small demo shape)
    X = jax.random.normal(kx, (B, S, H), dtype=jnp.float32)
    attack_init = 0.01 * jax.random.normal(ka, (B, S, H), dtype=jnp.float32)
    attention_mask = jnp.ones((B, S), dtype=jnp.int32)

    model = AttackPallas(attack_init)
    y = jax.block_until_ready(model(X, attention_mask))

    ref = X + attack_init
    assert y.shape == ref.shape and y.dtype == ref.dtype
    assert jnp.allclose(y, ref, atol=1e-6), "mismatch vs reference (same shape)"

    # Broadcast case: shared perturbation over the batch stays VMEM-resident.
    attack_shared = 0.01 * jax.random.normal(ka, (1, S, H), dtype=jnp.float32)
    y2 = jax.block_until_ready(apply_attack(X, attack_shared))
    assert jnp.allclose(y2, X + attack_shared, atol=1e-6), "mismatch (broadcast)"

    print("KERNEL_OK")
</pallas_src>

<mosaic_0001>
module attributes {stable_mosaic.version = 11 : i64} {
  func.func @_add_attack_kernel(%arg0: i32, %arg1: memref<1x512xf32, #tpu.memory_space<vmem>>, %arg2: memref<1x512xf32, #tpu.memory_space<vmem>>, %arg3: memref<1x512xf32, #tpu.memory_space<vmem>>) attributes {dimension_semantics = [#tpu.dimension_semantics<parallel>], iteration_bounds = array<i64: 1>, scalar_prefetch = 0 : i64, scratch_operands = 0 : i64, tpu.core_type = #tpu.core_type<tc>, window_params = [{transform_indices = @transform_0, window_bounds = array<i64: 1, 512>}, {transform_indices = @transform_1, window_bounds = array<i64: 1, 512>}, {transform_indices = @transform_2, window_bounds = array<i64: 1, 512>}]} {
    %c0 = arith.constant 0 : index
    %c0_0 = arith.constant 0 : index
    %0 = vector.load %arg1[%c0, %c0_0] : memref<1x512xf32, #tpu.memory_space<vmem>>, vector<1x512xf32>
    %c0_1 = arith.constant 0 : index
    %c0_2 = arith.constant 0 : index
    %1 = vector.load %arg2[%c0_1, %c0_2] : memref<1x512xf32, #tpu.memory_space<vmem>>, vector<1x512xf32>
    %2 = arith.addf %0, %1 : vector<1x512xf32>
    %c0_3 = arith.constant 0 : index
    %c0_4 = arith.constant 0 : index
    %3 = vector.load %arg3[%c0_3, %c0_4] : memref<1x512xf32, #tpu.memory_space<vmem>>, vector<1x512xf32>
    tpu.vector_store %arg3[%c0_3, %c0_4], %2 {strides = array<i32>} : memref<1x512xf32, #tpu.memory_space<vmem>>, vector<1x512xf32>,
    return
  }
  func.func @transform_0(%arg0: i32) -> (i32, i32) {
    %c0_i32 = arith.constant 0 : i32
    %c0_i32_0 = arith.constant 0 : i32
    return %arg0, %c0_i32 : i32, i32
  }
  func.func @transform_1(%arg0: i32) -> (i32, i32) {
    %c0_i32 = arith.constant 0 : i32
    %c0_i32_0 = arith.constant 0 : i32
    return %arg0, %c0_i32 : i32, i32
  }
  func.func @transform_2(%arg0: i32) -> (i32, i32) {
    %c0_i32 = arith.constant 0 : i32
    %c0_i32_0 = arith.constant 0 : i32
    return %arg0, %c0_i32 : i32, i32
  }
}

</mosaic_0001>

<bundles_post_ra>
// kernel: _apply_attack.1
= control target key start
LH: loop header
LB: loop body
LE: loop exit
PB: predicated region body
PF: predicated region fallthrough
CT: control target
= control target key end

     0   :  { %v14_v0 = vlaneseq  ;;  %s47_s0 = inlined_call_operand.vmem [shape: f32[1,512], index: 0, kind: input, shape index: {}]   ;;  %s48_s1 = inlined_call_operand.vmem [shape: f32[1,512], index: 1, kind: input, shape index: {}]   ;;  %s49_s2 = inlined_call_operand.vmem [shape: f32[1,512], index: 2, kind: output, shape index: {}]  }
   0x1   :  { %v11_v1 = vld [vmem:[%s47_s0] sm:$0xf] }
   0x2   :  { %v12_v2 = vld [vmem:[%s48_s1] sm:$0xf]  ;;  %vm16_vm0 = vcmp.lt.s32.totalorder %v14_v0, 512 }
   0x3   :  { %v13_v3 = vadd.f32 %v12_v2, %v11_v1 }
   0x5   :  { %18 = vst.msk [vmem:[%s49_s2] sm:$0xf] %vm16_vm0, %v13_v3 }

</bundles_post_ra>
